<compile_context>
chip_gen: v6e
topology: v6e:2x2x1
jax: 0.10.0
libtpu: 0.0.40
codegen_flags: <defaults>
</compile_context>

<pallas_src>
import functools

import jax
import jax.numpy as jnp
from jax.experimental import pallas as pl
from jax.experimental.pallas import tpu as pltpu  # noqa: F401  (TPU backend)


def _round_up(x, m):
    return (x + m - 1) // m * m


# --------------------------------------------------------------------------
# Fused kernel: Linear -> batch stats -> BN (folded scale/shift) -> activation
# --------------------------------------------------------------------------
def _embedding_kernel(x_ref, w_ref, b_ref, gamma_ref, beta_ref, o_ref, *,
                      activation, batchnorm, eps, n_valid, n_rows):
    # Linear: y = x @ W.T + b.  Contract directly against the PyTorch
    # (out, in) weight layout; MXU operands keep their incoming dtype,
    # accumulation is f32.
    y = jax.lax.dot_general(
        x_ref[...], w_ref[...],
        dimension_numbers=(((1,), (1,)), ((), ())),
        preferred_element_type=jnp.float32)
    y = y + b_ref[...]                                  # (n_rows, fp) f32

    if batchnorm:
        cnt = jnp.float32(n_valid)
        if n_rows > n_valid:
            # Only the padded-batch case needs row masking for the stats.
            row_ok = jax.lax.broadcasted_iota(jnp.int32, y.shape, 0) < n_valid
            ys = jnp.where(row_ok, y, 0.0)
        else:
            row_ok = None
            ys = y
        mean = jnp.sum(ys, axis=0, keepdims=True) / cnt  # (1, fp)
        d = y - mean
        if row_ok is not None:
            d = jnp.where(row_ok, d, 0.0)
        # Centered (two-pass) biased variance: y is VMEM-resident, and this
        # avoids E[y^2] - E[y]^2 cancellation.
        var = jnp.sum(d * d, axis=0, keepdims=True) / cnt
        # Fold BN affine + normalization into one scale/shift per feature.
        scale = gamma_ref[...] * jax.lax.rsqrt(var + eps)
        shift = beta_ref[...] - mean * scale
        y = y * scale + shift

    if activation == "relu":
        y = jnp.maximum(y, 0.0)
    elif activation == "tanhshrink":
        y = y - jnp.tanh(y)
    else:
        raise ValueError("Activation function not implemented.")

    o_ref[...] = y.astype(o_ref.dtype)


# --------------------------------------------------------------------------
# Wrapper
# --------------------------------------------------------------------------
def embedding_forward(x, weight, bias, gamma, beta, *, activation="relu",
                      batchnorm=True, eps=1e-5, mxu_dtype=jnp.bfloat16):
    """x: (N, in) f32; weight: (out, in) PyTorch layout; bias/gamma/beta: (out,)."""
    n, k = x.shape
    f, kw = weight.shape
    assert kw == k

    fp = _round_up(f, 128)       # lane-pad the OUTPUT feature dim only
    np_ = _round_up(n, 8)        # sublane-pad the batch rows

    xp = x.astype(mxu_dtype)
    if np_ != n:
        xp = jnp.zeros((np_, k), mxu_dtype).at[:n, :].set(xp)
    wp = weight.astype(mxu_dtype)
    if fp != f:
        wp = jnp.zeros((fp, k), mxu_dtype).at[:f, :].set(wp)
    # Per-feature vectors as (1, fp) lane-dense f32 rows.
    bp = jnp.zeros((1, fp), jnp.float32).at[0, :f].set(bias.astype(jnp.float32))
    gp = jnp.ones((1, fp), jnp.float32).at[0, :f].set(gamma.astype(jnp.float32))
    btp = jnp.zeros((1, fp), jnp.float32).at[0, :f].set(beta.astype(jnp.float32))

    kernel = functools.partial(
        _embedding_kernel, activation=activation, batchnorm=batchnorm,
        eps=float(eps), n_valid=n, n_rows=np_)

    # Single invocation, whole arrays as VMEM blocks (default specs).
    # VMEM footprint at the module's sizes: x 32 KiB (bf16) + W 16 KiB +
    # y/out 128 KiB + params <2 KiB  ->  well under any scoped VMEM limit.
    out = pl.pallas_call(
        kernel,
        out_shape=jax.ShapeDtypeStruct((np_, fp), jnp.float32),
    )(xp, wp, bp, gp, btp)

    return out[:n, :f]


# --------------------------------------------------------------------------
# Pure-JAX reference mirroring the PyTorch module.
# --------------------------------------------------------------------------
def _reference(x, weight, bias, gamma, beta, *, activation="relu",
               batchnorm=True, eps=1e-5, mxu_dtype=jnp.float32):
    xq = x.astype(mxu_dtype).astype(jnp.float32)
    wq = weight.astype(mxu_dtype).astype(jnp.float32)
    y = jnp.dot(xq, wq.T, precision=jax.lax.Precision.HIGHEST) + bias[None, :]
    if batchnorm:
        mean = y.mean(0, keepdims=True)
        var = ((y - mean) ** 2).mean(0, keepdims=True)
        y = (y - mean) * jax.lax.rsqrt(var + eps) * gamma[None, :] + beta[None, :]
    if activation == "relu":
        return jnp.maximum(y, 0.0)
    return y - jnp.tanh(y)


if __name__ == "__main__":
    # Shapes consistent with the module defaults: in=out=64, batch=256.
    N, IN_F, OUT_F = 256, 64, 64

    key = jax.random.PRNGKey(0)
    kx, kw, kb = jax.random.split(key, 3)

    x = jax.random.normal(kx, (N, IN_F), jnp.float32)

    # kaiming_uniform_(mode='fan_in', nonlinearity='relu'): bound = sqrt(2)*sqrt(3/fan_in)
    bound_w = jnp.sqrt(2.0) * jnp.sqrt(3.0 / IN_F)
    weight = jax.random.uniform(kw, (OUT_F, IN_F), jnp.float32, -bound_w, bound_w)
    # nn.Linear default bias init: U(-1/sqrt(fan_in), 1/sqrt(fan_in))
    bound_b = 1.0 / jnp.sqrt(jnp.float32(IN_F))
    bias = jax.random.uniform(kb, (OUT_F,), jnp.float32, -bound_b, bound_b)

    # BatchNorm1d default affine params.
    gamma = jnp.ones((OUT_F,), jnp.float32)
    beta = jnp.zeros((OUT_F,), jnp.float32)

    # 1) f32 MXU operands, relu (tight check vs f32 reference).
    out = embedding_forward(x, weight, bias, gamma, beta,
                            activation="relu", mxu_dtype=jnp.float32)
    out = jax.block_until_ready(out)
    ref = _reference(x, weight, bias, gamma, beta, activation="relu")
    assert out.shape == (N, OUT_F)
    assert jnp.allclose(out, ref, atol=1e-4, rtol=1e-4), "f32 relu mismatch"

    # 2) f32 MXU operands, tanhshrink.
    out_t = embedding_forward(x, weight, bias, gamma, beta,
                              activation="tanhshrink", mxu_dtype=jnp.float32)
    out_t = jax.block_until_ready(out_t)
    ref_t = _reference(x, weight, bias, gamma, beta, activation="tanhshrink")
    assert jnp.allclose(out_t, ref_t, atol=1e-4, rtol=1e-4), "tanhshrink mismatch"

    # 3) bf16 MXU operands (default fast path on every TPU generation), f32
    #    accumulation; compare against a reference fed the same bf16-rounded
    #    operands.
    out_bf = embedding_forward(x, weight, bias, gamma, beta,
                               activation="relu", mxu_dtype=jnp.bfloat16)
    out_bf = jax.block_until_ready(out_bf)
    ref_bf = _reference(x, weight, bias, gamma, beta, activation="relu",
                        mxu_dtype=jnp.bfloat16)
    assert jnp.allclose(out_bf, ref_bf, atol=2e-3, rtol=2e-3), "bf16 relu mismatch"

    # 4) batchnorm disabled path.
    out_nb = embedding_forward(x, weight, bias, gamma, beta,
                               activation="relu", batchnorm=False,
                               mxu_dtype=jnp.float32)
    out_nb = jax.block_until_ready(out_nb)
    ref_nb = _reference(x, weight, bias, gamma, beta, activation="relu",
                        batchnorm=False)
    assert jnp.allclose(out_nb, ref_nb, atol=1e-4, rtol=1e-4), "no-bn mismatch"

    print("KERNEL_OK")
</pallas_src>

<mosaic_0001>
module attributes {stable_mosaic.version = 11 : i64} {
  func.func @_embedding_kernel(%arg0: memref<256x64xf32, #tpu.memory_space<vmem>>, %arg1: memref<128x64xf32, #tpu.memory_space<vmem>>, %arg2: memref<1x128xf32, #tpu.memory_space<vmem>>, %arg3: memref<1x128xf32, #tpu.memory_space<vmem>>, %arg4: memref<1x128xf32, #tpu.memory_space<vmem>>, %arg5: memref<256x128xf32, #tpu.memory_space<vmem>>) attributes {dimension_semantics = [], scalar_prefetch = 0 : i64, scratch_operands = 0 : i64, tpu.core_type = #tpu.core_type<tc>} {
    %c0 = arith.constant 0 : index
    %c0_0 = arith.constant 0 : index
    %0 = vector.load %arg0[%c0, %c0_0] : memref<256x64xf32, #tpu.memory_space<vmem>>, vector<256x64xf32>
    %c0_1 = arith.constant 0 : index
    %c0_2 = arith.constant 0 : index
    %1 = vector.load %arg1[%c0_1, %c0_2] : memref<128x64xf32, #tpu.memory_space<vmem>>, vector<128x64xf32>
    %cst = arith.constant dense<0.000000e+00> : vector<256x128xf32>
    %2 = tpu.matmul %0, %1, %cst {dimension_numbers = #tpu.dot_dimension_numbers<[1], [1], [0], [0], [0, 0, 1, 0], [], []>} : vector<256x64xf32>, vector<128x64xf32>, vector<256x128xf32> -> vector<256x128xf32>
    %c0_3 = arith.constant 0 : index
    %c0_4 = arith.constant 0 : index
    %3 = vector.load %arg2[%c0_3, %c0_4] : memref<1x128xf32, #tpu.memory_space<vmem>>, vector<1x128xf32>
    %4 = vector.broadcast %3 : vector<1x128xf32> to vector<256x128xf32>
    %5 = arith.addf %2, %4 : vector<256x128xf32>
    %cst_5 = arith.constant dense<0.000000e+00> : vector<128xf32>
    %6 = vector.multi_reduction <add>, %5, %cst_5 [0] : vector<256x128xf32> to vector<128xf32>
    %7 = vector.shape_cast %6 : vector<128xf32> to vector<1x128xf32>
    %cst_6 = arith.constant 2.560000e+02 : f32
    %8 = vector.broadcast %cst_6 : f32 to vector<1x128xf32>
    %9 = arith.divf %7, %8 : vector<1x128xf32>
    %10 = vector.broadcast %9 : vector<1x128xf32> to vector<256x128xf32>
    %11 = arith.subf %5, %10 : vector<256x128xf32>
    %12 = arith.mulf %11, %11 : vector<256x128xf32>
    %cst_7 = arith.constant dense<0.000000e+00> : vector<128xf32>
    %13 = vector.multi_reduction <add>, %12, %cst_7 [0] : vector<256x128xf32> to vector<128xf32>
    %14 = vector.shape_cast %13 : vector<128xf32> to vector<1x128xf32>
    %cst_8 = arith.constant 2.560000e+02 : f32
    %15 = vector.broadcast %cst_8 : f32 to vector<1x128xf32>
    %16 = arith.divf %14, %15 : vector<1x128xf32>
    %c0_9 = arith.constant 0 : index
    %c0_10 = arith.constant 0 : index
    %17 = vector.load %arg3[%c0_9, %c0_10] : memref<1x128xf32, #tpu.memory_space<vmem>>, vector<1x128xf32>
    %cst_11 = arith.constant 9.99999974E-6 : f32
    %18 = vector.broadcast %cst_11 : f32 to vector<1x128xf32>
    %19 = arith.addf %16, %18 : vector<1x128xf32>
    %20 = math.rsqrt %19 : vector<1x128xf32>
    %21 = arith.mulf %17, %20 : vector<1x128xf32>
    %c0_12 = arith.constant 0 : index
    %c0_13 = arith.constant 0 : index
    %22 = vector.load %arg4[%c0_12, %c0_13] : memref<1x128xf32, #tpu.memory_space<vmem>>, vector<1x128xf32>
    %23 = arith.mulf %9, %21 : vector<1x128xf32>
    %24 = arith.subf %22, %23 : vector<1x128xf32>
    %25 = vector.broadcast %21 : vector<1x128xf32> to vector<256x128xf32>
    %26 = arith.mulf %5, %25 : vector<256x128xf32>
    %27 = vector.broadcast %24 : vector<1x128xf32> to vector<256x128xf32>
    %28 = arith.addf %26, %27 : vector<256x128xf32>
    %cst_14 = arith.constant 0.000000e+00 : f32
    %29 = vector.broadcast %cst_14 : f32 to vector<256x128xf32>
    %30 = arith.maximumf %28, %29 : vector<256x128xf32>
    %c0_15 = arith.constant 0 : index
    %c0_16 = arith.constant 0 : index
    %31 = vector.load %arg5[%c0_15, %c0_16] : memref<256x128xf32, #tpu.memory_space<vmem>>, vector<256x128xf32>
    tpu.vector_store %arg5[%c0_15, %c0_16], %30 {strides = array<i32>} : memref<256x128xf32, #tpu.memory_space<vmem>>, vector<256x128xf32>,
    return
  }
}

</mosaic_0001>

<bundles_post_ra>
// kernel: tpu_custom_call.1
= control target key start
LH: loop header
LB: loop body
LE: loop exit
PB: predicated region body
PF: predicated region fallthrough
CT: control target
= control target key end

     0   :  { %vm76_vm0 = vcmask 523264   ;;  %s1530_s0 = inlined_call_operand.vmem [shape: f32[256,64], index: 0, kind: input, shape index: {}]   ;;  %s1531_s1 = inlined_call_operand.vmem [shape: f32[128,64], index: 1, kind: input, shape index: {}]   ;;  %s1532_s2 = inlined_call_operand.vmem [shape: f32[1,128], index: 2, kind: input, shape index: {}]   ;;  %s1533_s3 = inlined_call_operand.vmem [shape: f32[1,128], index: 3, kind: input, shape index: {}]   ;;  %s1534_s4 = inlined_call_operand.vmem [shape: f32[1,128], index: 4, kind: input, shape index: {}]   ;;  %s1535_s5 = inlined_call_operand.hbm [shape: f32[256,128], index: 5, kind: output, shape index: {}]  }
   0x1   :  { %v68_v0 = vld [vmem:[%s1531_s1 + $0x78] sm:$0xff]  ;;  %v67_v1 = vld [vmem:[%s1531_s1 + $0x70] sm:$0xff]  ;;  %v66_v2 = vld [vmem:[%s1531_s1 + $0x68] sm:$0xff] }
   0x2   :  { %847 = vmatprep.subr.msk.mxu0 %vm76_vm0, %v68_v0  ;;  %927 = vmatprep.subr.msk.mxu1 %vm76_vm0, %v68_v0  ;;  %v21_v3 = vld [vmem:[%s1530_s0] sm:$0xff]  ;;  %v64_v6 = vld [vmem:[%s1531_s1 + $0x58] sm:$0xff]  ;;  %v63_v7 = vld [vmem:[%s1531_s1 + $0x50] sm:$0xff] }
   0x3   :  { %848 = vmatpush3.xpose.msk.msra.mxu0 %vm76_vm0, %v68_v0  ;;  %943 = vmatpush3.xpose.msk.msra.mxu1 %vm76_vm0, %v68_v0  ;;  %v65_v4 = vld [vmem:[%s1531_s1 + $0x60] sm:$0xff] }
   0x4   :  { %849 = vmatprep.subr.msk.mxu0 %vm76_vm0, %v67_v1  ;;  %928 = vmatprep.subr.msk.mxu1 %vm76_vm0, %v67_v1  ;;  %v37_v5 = vld [vmem:[%s1530_s0 + $0x80] sm:$0xff] }
   0x5   :  { %879 = vmatprep.mubr.msk.f32.mxu0 %vm76_vm0, %v21_v3  ;;  %903 = vmatprep.mubr.msk.f32.mxu1 %vm76_vm0, %v37_v5 }
   0x7   :  { %850 = vmatpush3.xpose.msk.msra.mxu0 %vm76_vm0, %v67_v1  ;;  %944 = vmatpush3.xpose.msk.msra.mxu1 %vm76_vm0, %v67_v1 }
   0x8   :  { %851 = vmatprep.subr.msk.mxu0 %vm76_vm0, %v66_v2  ;;  %929 = vmatprep.subr.msk.mxu1 %vm76_vm0, %v66_v2 }
   0xb   :  { %852 = vmatpush3.xpose.msk.msra.mxu0 %vm76_vm0, %v66_v2  ;;  %945 = vmatpush3.xpose.msk.msra.mxu1 %vm76_vm0, %v66_v2 }
   0xc   :  { %853 = vmatprep.subr.msk.mxu0 %vm76_vm0, %v65_v4  ;;  %930 = vmatprep.subr.msk.mxu1 %vm76_vm0, %v65_v4 }
   0xf   :  { %854 = vmatpush3.xpose.msk.msra.mxu0 %vm76_vm0, %v65_v4  ;;  %946 = vmatpush3.xpose.msk.msra.mxu1 %vm76_vm0, %v65_v4 }
  0x10   :  { %855 = vmatprep.subr.msk.mxu0 %vm76_vm0, %v64_v6  ;;  %931 = vmatprep.subr.msk.mxu1 %vm76_vm0, %v64_v6 }
  0x11   :  { %10 = vsyncpa [#allocation3], 0  ;;  %v62_v8 = vld [vmem:[%s1531_s1 + $0x48] sm:$0xff]  ;;  %v61_v9 = vld [vmem:[%s1531_s1 + $0x40] sm:$0xff] }
  0x12   :  { %v60_v10 = vld [vmem:[%s1531_s1 + $0x38] sm:$0xff]  ;;  %v59_v11 = vld [vmem:[%s1531_s1 + $0x30] sm:$0xff]  ;;  %v58_v12 = vld [vmem:[%s1531_s1 + $0x28] sm:$0xff] }
  0x13   :  { %856 = vmatpush3.xpose.msk.msra.mxu0 %vm76_vm0, %v64_v6  ;;  %947 = vmatpush3.xpose.msk.msra.mxu1 %vm76_vm0, %v64_v6  ;;  %v57_v13 = vld [vmem:[%s1531_s1 + $0x20] sm:$0xff]  ;;  %v56_v14 = vld [vmem:[%s1531_s1 + $0x18] sm:$0xff]  ;;  %v55_v15 = vld [vmem:[%s1531_s1 + $0x10] sm:$0xff] }
  0x14   :  { %857 = vmatprep.subr.msk.mxu0 %vm76_vm0, %v63_v7  ;;  %932 = vmatprep.subr.msk.mxu1 %vm76_vm0, %v63_v7  ;;  %v54_v16 = vld [vmem:[%s1531_s1 + $0x8] sm:$0xff]  ;;  %v53_v17 = vld [vmem:[%s1531_s1] sm:$0xff]  ;;  %v23_v20 = vld [vmem:[%s1530_s0 + $0x10] sm:$0xff] }
  0x15   :  { %v22_v18 = vld [vmem:[%s1530_s0 + $0x8] sm:$0xff]  ;;  %v39_v21 = vld [vmem:[%s1530_s0 + $0x90] sm:$0xff]  ;;  %v24_v22 = vld [vmem:[%s1530_s0 + $0x18] sm:$0xff] }
  0x16   :  { %v38_v19 = vld [vmem:[%s1530_s0 + $0x88] sm:$0xff]  ;;  %v40_v23 = vld [vmem:[%s1530_s0 + $0x98] sm:$0xff]  ;;  %v25_v24 = vld [vmem:[%s1530_s0 + $0x20] sm:$0xff] }
  0x17   :  { %858 = vmatpush3.xpose.msk.msra.mxu0 %vm76_vm0, %v63_v7  ;;  %948 = vmatpush3.xpose.msk.msra.mxu1 %vm76_vm0, %v63_v7  ;;  %v41_v25 = vld [vmem:[%s1530_s0 + $0xa0] sm:$0xff]  ;;  %v26_v26 = vld [vmem:[%s1530_s0 + $0x28] sm:$0xff]  ;;  %v27_v28 = vld [vmem:[%s1530_s0 + $0x30] sm:$0xff] }
  0x18   :  { %859 = vmatprep.subr.msk.mxu0 %vm76_vm0, %v62_v8  ;;  %933 = vmatprep.subr.msk.mxu1 %vm76_vm0, %v62_v8  ;;  %v42_v27 = vld [vmem:[%s1530_s0 + $0xa8] sm:$0xff]  ;;  %v43_v29 = vld [vmem:[%s1530_s0 + $0xb0] sm:$0xff]  ;;  %v28_v30 = vld [vmem:[%s1530_s0 + $0x38] sm:$0xff] }
  0x19   :  { %v44_v31 = vld [vmem:[%s1530_s0 + $0xb8] sm:$0xff]  ;;  %v29_v32 = vld [vmem:[%s1530_s0 + $0x40] sm:$0xff]  ;;  %v30_v34 = vld [vmem:[%s1530_s0 + $0x48] sm:$0xff] }
  0x1a   :  { %v45_v33 = vld [vmem:[%s1530_s0 + $0xc0] sm:$0xff]  ;;  %v46_v35 = vld [vmem:[%s1530_s0 + $0xc8] sm:$0xff]  ;;  %v31_v36 = vld [vmem:[%s1530_s0 + $0x50] sm:$0xff] }
  0x1b   :  { %860 = vmatpush3.xpose.msk.msra.mxu0 %vm76_vm0, %v62_v8  ;;  %949 = vmatpush3.xpose.msk.msra.mxu1 %vm76_vm0, %v62_v8  ;;  %v47_v37 = vld [vmem:[%s1530_s0 + $0xd0] sm:$0xff]  ;;  %v32_v38 = vld [vmem:[%s1530_s0 + $0x58] sm:$0xff]  ;;  %v33_v40 = vld [vmem:[%s1530_s0 + $0x60] sm:$0xff] }
  0x1c   :  { %861 = vmatprep.subr.msk.mxu0 %vm76_vm0, %v61_v9  ;;  %934 = vmatprep.subr.msk.mxu1 %vm76_vm0, %v61_v9  ;;  %v48_v39 = vld [vmem:[%s1530_s0 + $0xd8] sm:$0xff]  ;;  %v49_v41 = vld [vmem:[%s1530_s0 + $0xe0] sm:$0xff]  ;;  %v34_v42 = vld [vmem:[%s1530_s0 + $0x68] sm:$0xff] }
  0x1d   :  { %v50_v43 = vld [vmem:[%s1530_s0 + $0xe8] sm:$0xff]  ;;  %v35_v44 = vld [vmem:[%s1530_s0 + $0x70] sm:$0xff]  ;;  %v36_v46 = vld [vmem:[%s1530_s0 + $0x78] sm:$0xff] }
  0x1e   :  { %v51_v45 = vld [vmem:[%s1530_s0 + $0xf0] sm:$0xff]  ;;  %v52_v47 = vld [vmem:[%s1530_s0 + $0xf8] sm:$0xff]  ;;  %v1262_v50 = vld [vmem:[%s1532_s2] ss:$0 sm:$0xff] }
  0x1f   :  { %862 = vmatpush3.xpose.msk.msra.mxu0 %vm76_vm0, %v61_v9  ;;  %950 = vmatpush3.xpose.msk.msra.mxu1 %vm76_vm0, %v61_v9 }
  0x20   :  { %863 = vmatprep.subr.msk.mxu0 %vm76_vm0, %v60_v10  ;;  %935 = vmatprep.subr.msk.mxu1 %vm76_vm0, %v60_v10 }
  0x23   :  { %864 = vmatpush3.xpose.msk.msra.mxu0 %vm76_vm0, %v60_v10  ;;  %951 = vmatpush3.xpose.msk.msra.mxu1 %vm76_vm0, %v60_v10 }
  0x24   :  { %865 = vmatprep.subr.msk.mxu0 %vm76_vm0, %v59_v11  ;;  %936 = vmatprep.subr.msk.mxu1 %vm76_vm0, %v59_v11 }
  0x27   :  { %866 = vmatpush3.xpose.msk.msra.mxu0 %vm76_vm0, %v59_v11  ;;  %952 = vmatpush3.xpose.msk.msra.mxu1 %vm76_vm0, %v59_v11 }
  0x28   :  { %867 = vmatprep.subr.msk.mxu0 %vm76_vm0, %v58_v12  ;;  %937 = vmatprep.subr.msk.mxu1 %vm76_vm0, %v58_v12 }
  0x2b   :  { %868 = vmatpush3.xpose.msk.msra.mxu0 %vm76_vm0, %v58_v12  ;;  %953 = vmatpush3.xpose.msk.msra.mxu1 %vm76_vm0, %v58_v12 }
  0x2c   :  { %869 = vmatprep.subr.msk.mxu0 %vm76_vm0, %v57_v13  ;;  %938 = vmatprep.subr.msk.mxu1 %vm76_vm0, %v57_v13 }
  0x2f   :  { %870 = vmatpush3.xpose.msk.msra.mxu0 %vm76_vm0, %v57_v13  ;;  %954 = vmatpush3.xpose.msk.msra.mxu1 %vm76_vm0, %v57_v13 }
  0x30   :  { %871 = vmatprep.subr.msk.mxu0 %vm76_vm0, %v56_v14  ;;  %939 = vmatprep.subr.msk.mxu1 %vm76_vm0, %v56_v14 }
  0x33   :  { %872 = vmatpush3.xpose.msk.msra.mxu0 %vm76_vm0, %v56_v14  ;;  %955 = vmatpush3.xpose.msk.msra.mxu1 %vm76_vm0, %v56_v14 }
  0x34   :  { %873 = vmatprep.subr.msk.mxu0 %vm76_vm0, %v55_v15  ;;  %940 = vmatprep.subr.msk.mxu1 %vm76_vm0, %v55_v15 }
  0x37   :  { %874 = vmatpush3.xpose.msk.msra.mxu0 %vm76_vm0, %v55_v15  ;;  %956 = vmatpush3.xpose.msk.msra.mxu1 %vm76_vm0, %v55_v15 }
  0x38   :  { %875 = vmatprep.subr.msk.mxu0 %vm76_vm0, %v54_v16  ;;  %941 = vmatprep.subr.msk.mxu1 %vm76_vm0, %v54_v16 }
  0x3b   :  { %876 = vmatpush3.xpose.msk.msra.mxu0 %vm76_vm0, %v54_v16  ;;  %957 = vmatpush3.xpose.msk.msra.mxu1 %vm76_vm0, %v54_v16 }
  0x3c   :  { %877 = vmatprep.subr.msk.mxu0 %vm76_vm0, %v53_v17  ;;  %942 = vmatprep.subr.msk.mxu1 %vm76_vm0, %v53_v17 }
  0x3f   :  { %878 = vmatpush3.xpose.msk.msra.mxu0 %vm76_vm0, %v53_v17  ;;  %958 = vmatpush3.xpose.msk.msra.mxu1 %vm76_vm0, %v53_v17 }
  0x42   :  { %880 = vmatmul.mubr.msk.f32.vlgmr.msra.gmra.mxu0 %vm76_vm0, %v22_v18  ;;  %904 = vmatmul.mubr.msk.f32.vlgmr.msra.gmra.mxu1 %vm76_vm0, %v38_v19 }
  0x43   :  { %882 = vmatprep.mubr.msk.f32.mxu0 %vm76_vm0, %v23_v20  ;;  %906 = vmatprep.mubr.msk.f32.mxu1 %vm76_vm0, %v39_v21 }
  0x46   :  { %883 = vmatmul.mubr.msk.f32.gmra.mxu0 %vm76_vm0, %v24_v22  ;;  %907 = vmatmul.mubr.msk.f32.gmra.mxu1 %vm76_vm0, %v40_v23 }
  0x47   :  { %885 = vmatprep.mubr.msk.f32.mxu0 %vm76_vm0, %v25_v24  ;;  %909 = vmatprep.mubr.msk.f32.mxu1 %vm76_vm0, %v41_v25 }
  0x4a   :  { %886 = vmatmul.mubr.msk.f32.gmra.mxu0 %vm76_vm0, %v26_v26  ;;  %910 = vmatmul.mubr.msk.f32.gmra.mxu1 %vm76_vm0, %v42_v27 }
  0x4b   :  { %888 = vmatprep.mubr.msk.f32.mxu0 %vm76_vm0, %v27_v28  ;;  %912 = vmatprep.mubr.msk.f32.mxu1 %vm76_vm0, %v43_v29 }
  0x4e   :  { %889 = vmatmul.mubr.msk.f32.gmra.mxu0 %vm76_vm0, %v28_v30  ;;  %913 = vmatmul.mubr.msk.f32.gmra.mxu1 %vm76_vm0, %v44_v31 }
  0x4f   :  { %891 = vmatprep.mubr.msk.f32.mxu0 %vm76_vm0, %v29_v32  ;;  %915 = vmatprep.mubr.msk.f32.mxu1 %vm76_vm0, %v45_v33 }
  0x52   :  { %892 = vmatmul.mubr.msk.f32.gmra.mxu0 %vm76_vm0, %v30_v34  ;;  %916 = vmatmul.mubr.msk.f32.gmra.mxu1 %vm76_vm0, %v46_v35 }
  0x53   :  { %894 = vmatprep.mubr.msk.f32.mxu0 %vm76_vm0, %v31_v36  ;;  %918 = vmatprep.mubr.msk.f32.mxu1 %vm76_vm0, %v47_v37 }
  0x56   :  { %895 = vmatmul.mubr.msk.f32.gmra.mxu0 %vm76_vm0, %v32_v38  ;;  %919 = vmatmul.mubr.msk.f32.gmra.mxu1 %vm76_vm0, %v48_v39 }
  0x57   :  { %897 = vmatprep.mubr.msk.f32.mxu0 %vm76_vm0, %v33_v40  ;;  %921 = vmatprep.mubr.msk.f32.mxu1 %vm76_vm0, %v49_v41 }
  0x5a   :  { %898 = vmatmul.mubr.msk.f32.gmra.mxu0 %vm76_vm0, %v34_v42  ;;  %922 = vmatmul.mubr.msk.f32.gmra.mxu1 %vm76_vm0, %v50_v43 }
  0x5b   :  { %900 = vmatprep.mubr.msk.f32.mxu0 %vm76_vm0, %v35_v44  ;;  %924 = vmatprep.mubr.msk.f32.mxu1 %vm76_vm0, %v51_v45 }
  0x5e   :  { %901 = vmatmul.mubr.msk.f32.gmra.mxu0 %vm76_vm0, %v36_v46  ;;  %925 = vmatmul.mubr.msk.f32.gmra.mxu1 %vm76_vm0, %v52_v47 }
 0x102   :  { %v881_v48 = vpop.f32.mrf.mxu0  ;;  %v905_v49 = vpop.f32.mrf.mxu1 }
 0x103   :  { %v1268_v55 = vadd.f32 %v881_v48, %v1262_v50  ;;  %v1332_v43 = vadd.f32 %v905_v49, %v1262_v50 }
 0x104   :  { %v287_v51 = vpop.f32.mrf.mxu0  ;;  %v367_v54 = vpop.f32.mrf.mxu1 }
 0x105   :  { %v1265_v52 = vadd.f32 %v1262_v50, %v287_v51  ;;  %v1328_v40 = vadd.f32 %v1262_v50, %v367_v54 }
 0x106   :  { %v884_v53 = vpop.f32.mrf.mxu0  ;;  %v908_v60 = vpop.f32.mrf.mxu1 }
 0x107   :  { %v446_v57 = vadd.f32 %v1268_v55, %v1265_v52  ;;  %v1276_v61 = vadd.f32 %v884_v53, %v1262_v50  ;;  %v1340_v48 = vadd.f32 %v908_v60, %v1262_v50 }
 0x108   :  { %v297_v56 = vpop.f32.mrf.mxu0  ;;  %v377_v3 = vpop.f32.mrf.mxu1 }
 0x109   :  { %v1273_v58 = vadd.f32 %v1262_v50, %v297_v56  ;;  %v1336_v45 = vadd.f32 %v1262_v50, %v377_v3 }
 0x10a   :  { %v887_v59 = vpop.f32.mrf.mxu0  ;;  %v911_v10 = vpop.f32.mrf.mxu1 }
 0x10b   :  { %v447_v62 = vadd.f32 %v446_v57, %v1273_v58  ;;  %v1284_v4 = vadd.f32 %v887_v59, %v1262_v50  ;;  %v1348_v56 = vadd.f32 %v911_v10, %v1262_v50 }
 0x10c   :  { %v307_v63 = vpop.f32.mrf.mxu0  ;;  %v387_v17 = vpop.f32.mrf.mxu1 }
 0x10d   :  { %v1280_v0 = vadd.f32 %v1262_v50, %v307_v63  ;;  %v448_v1 = vadd.f32 %v447_v62, %v1276_v61  ;;  %v1344_v53 = vadd.f32 %v1262_v50, %v387_v17 }
 0x10e   :  { %v890_v2 = vpop.f32.mrf.mxu0  ;;  %v914_v24 = vpop.f32.mrf.mxu1 }
 0x10f   :  { %v449_v5 = vadd.f32 %v448_v1, %v1280_v0  ;;  %v1292_v11 = vadd.f32 %v890_v2, %v1262_v50  ;;  %v1356_v63 = vadd.f32 %v914_v24, %v1262_v50 }
 0x110   :  { %v317_v6 = vpop.f32.mrf.mxu0  ;;  %v397_v31 = vpop.f32.mrf.mxu1 }
 0x111   :  { %v1288_v7 = vadd.f32 %v1262_v50, %v317_v6  ;;  %v450_v8 = vadd.f32 %v449_v5, %v1284_v4  ;;  %v1352_v59 = vadd.f32 %v1262_v50, %v397_v31 }
 0x112   :  { %v893_v9 = vpop.f32.mrf.mxu0  ;;  %v917_v37 = vpop.f32.mrf.mxu1 }
 0x113   :  { %v451_v12 = vadd.f32 %v450_v8, %v1288_v7  ;;  %v1300_v18 = vadd.f32 %v893_v9, %v1262_v50  ;;  %v1364_v6 = vadd.f32 %v917_v37, %v1262_v50 }
 0x114   :  { %v327_v13 = vpop.f32.mrf.mxu0  ;;  %v407_v42 = vpop.f32.mrf.mxu1 }
 0x115   :  { %v1296_v14 = vadd.f32 %v1262_v50, %v327_v13  ;;  %v452_v15 = vadd.f32 %v451_v12, %v1292_v11  ;;  %v1360_v2 = vadd.f32 %v1262_v50, %v407_v42 }
 0x116   :  { %v896_v16 = vpop.f32.mrf.mxu0  ;;  %v920_v47 = vpop.f32.mrf.mxu1 }
 0x117   :  { %v453_v19 = vadd.f32 %v452_v15, %v1296_v14  ;;  %v1308_v25 = vadd.f32 %v896_v16, %v1262_v50  ;;  %v1372_v13 = vadd.f32 %v920_v47, %v1262_v50 }
 0x118   :  { %v337_v20 = vpop.f32.mrf.mxu0  ;;  %v417_v49 = vpop.f32.mrf.mxu1 }
 0x119   :  { %v1304_v21 = vadd.f32 %v1262_v50, %v337_v20  ;;  %v454_v22 = vadd.f32 %v453_v19, %v1300_v18  ;;  %v1368_v9 = vadd.f32 %v1262_v50, %v417_v49 }
 0x11a   :  { %v899_v23 = vpop.f32.mrf.mxu0  ;;  %v923_v60 = vpop.f32.mrf.mxu1 }
 0x11b   :  { %v455_v26 = vadd.f32 %v454_v22, %v1304_v21  ;;  %v1316_v32 = vadd.f32 %v899_v23, %v1262_v50  ;;  %v1380_v20 = vadd.f32 %v923_v60, %v1262_v50 }
 0x11c   :  { %v347_v27 = vpop.f32.mrf.mxu0  ;;  %v427_v5 = vpop.f32.mrf.mxu1 }
 0x11d   :  { %v1312_v28 = vadd.f32 %v1262_v50, %v347_v27  ;;  %v456_v29 = vadd.f32 %v455_v26, %v1308_v25  ;;  %v1376_v16 = vadd.f32 %v1262_v50, %v427_v5 }
 0x11e   :  { %v902_v30 = vpop.f32.mrf.mxu0  ;;  %v926_v12 = vpop.f32.mrf.mxu1 }
 0x11f   :  { %v457_v33 = vadd.f32 %v456_v29, %v1312_v28  ;;  %v1324_v38 = vadd.f32 %v902_v30, %v1262_v50  ;;  %v1388_v26 = vadd.f32 %v926_v12, %v1262_v50 }
 0x120   :  { %v357_v34 = vpop.f32.mrf.mxu0  ;;  %v437_v19 = vpop.f32.mrf.mxu1 }
 0x121   :  { %v1320_v35 = vadd.f32 %v1262_v50, %v357_v34  ;;  %v458_v36 = vadd.f32 %v457_v33, %v1316_v32  ;;  %v1384_v23 = vadd.f32 %v1262_v50, %v437_v19 }
 0x123   :  { %v459_v39 = vadd.f32 %v458_v36, %v1320_v35 }
 0x125   :  { %v460_v41 = vadd.f32 %v459_v39, %v1324_v38 }
 0x127   :  { %v461_v44 = vadd.f32 %v460_v41, %v1328_v40 }
 0x129   :  { %v462_v46 = vadd.f32 %v461_v44, %v1332_v43 }
 0x12b   :  { %v463_v51 = vadd.f32 %v462_v46, %v1336_v45 }
 0x12d   :  { %v464_v54 = vadd.f32 %v463_v51, %v1340_v48 }
 0x12f   :  { %v465_v57 = vadd.f32 %v464_v54, %v1344_v53 }
 0x131   :  { %v466_v62 = vadd.f32 %v465_v57, %v1348_v56 }
 0x133   :  { %v467_v1 = vadd.f32 %v466_v62, %v1352_v59 }
 0x135   :  { %v468_v3 = vadd.f32 %v467_v1, %v1356_v63 }
 0x137   :  { %v469_v8 = vadd.f32 %v468_v3, %v1360_v2 }
 0x139   :  { %v470_v10 = vadd.f32 %v469_v8, %v1364_v6 }
 0x13b   :  { %v471_v15 = vadd.f32 %v470_v10, %v1368_v9 }
 0x13d   :  { %v472_v17 = vadd.f32 %v471_v15, %v1372_v13 }
 0x13f   :  { %v473_v22 = vadd.f32 %v472_v17, %v1376_v16 }
 0x141   :  { %v474_v24 = vadd.f32 %v473_v22, %v1380_v20 }
 0x143   :  { %v475_v27 = vadd.f32 %v474_v24, %v1384_v23 }
 0x145   :  { %v476_v29 = vadd.f32 %v475_v27, %v1388_v26 }
 0x147   :  { %v477_v30 = vrot.slane %v476_v29, 4 }
 0x149   :  { %v478_v31 = vadd.f32 %v477_v30, %v476_v29 }
 0x14b   :  { %v479_v33 = vrot.slane %v478_v31, 2 }
 0x14d   :  { %v480_v34 = vadd.f32 %v479_v33, %v478_v31 }
 0x14f   :  { %v481_v36 = vrot.slane %v480_v34, 1 }
 0x151   :  { %v482_v37 = vadd.f32 %v481_v36, %v480_v34 }
 0x153   :  { %v1392_v39 = vmul.f32 0.00390625, %v482_v37 }
 0x155   :  { %v485_v41 = vsub.f32 %v1265_v52, %v1392_v39  ;;  %v486_v42 = vsub.f32 %v1268_v55, %v1392_v39  ;;  %v487_v50 = vsub.f32 %v1273_v58, %v1392_v39  ;;  %v488_v47 = vsub.f32 %v1276_v61, %v1392_v39 }
 0x156   :  { %v489_v51 = vsub.f32 %v1280_v0, %v1392_v39  ;;  %v490_v57 = vsub.f32 %v1284_v4, %v1392_v39  ;;  %v491_v1 = vsub.f32 %v1288_v7, %v1392_v39  ;;  %v492_v8 = vsub.f32 %v1292_v11, %v1392_v39 }
 0x157   :  { %v517_v44 = vmul.f32 %v485_v41, %v485_v41  ;;  %v518_v46 = vmul.f32 %v486_v42, %v486_v42  ;;  %v519_v54 = vmul.f32 %v487_v50, %v487_v50  ;;  %v520_v62 = vmul.f32 %v488_v47, %v488_v47 }
 0x158   :  { %v521_v3 = vmul.f32 %v489_v51, %v489_v51  ;;  %v522_v10 = vmul.f32 %v490_v57, %v490_v57  ;;  %v493_v15 = vsub.f32 %v1296_v14, %v1392_v39  ;;  %v523_v17 = vmul.f32 %v491_v1, %v491_v1 }
 0x159   :  { %v549_v49 = vadd.f32 %v518_v46, %v517_v44  ;;  %v494_v22 = vsub.f32 %v1300_v18, %v1392_v39  ;;  %v524_v24 = vmul.f32 %v492_v8, %v492_v8  ;;  %v495_v29 = vsub.f32 %v1304_v21, %v1392_v39 }
 0x15a   :  { %v525_v30 = vmul.f32 %v493_v15, %v493_v15  ;;  %v496_v33 = vsub.f32 %v1308_v25, %v1392_v39  ;;  %v497_v37 = vsub.f32 %v1312_v28, %v1392_v39  ;;  %v498_v50 = vsub.f32 %v1316_v32, %v1392_v39 }
 0x15b   :  { %v550_v60 = vadd.f32 %v549_v49, %v519_v54  ;;  %v526_v34 = vmul.f32 %v494_v22, %v494_v22  ;;  %v527_v41 = vmul.f32 %v495_v29, %v495_v29  ;;  %v499_v47 = vsub.f32 %v1320_v35, %v1392_v39 }
 0x15c   :  { %v528_v44 = vmul.f32 %v496_v33, %v496_v33  ;;  %v529_v51 = vmul.f32 %v497_v37, %v497_v37  ;;  %v500_v49 = vsub.f32 %v1324_v38, %v1392_v39  ;;  %v530_v57 = vmul.f32 %v498_v50, %v498_v50 }
 0x15d   :  { %v551_v5 = vadd.f32 %v550_v60, %v520_v62  ;;  %v501_v60 = vsub.f32 %v1328_v40, %v1392_v39  ;;  %v531_v1 = vmul.f32 %v499_v47, %v499_v47 }
 0x15e   :  { %v532_v8 = vmul.f32 %v500_v49, %v500_v49 }
 0x15f   :  { %v552_v12 = vadd.f32 %v551_v5, %v521_v3  ;;  %v502_v5 = vsub.f32 %v1332_v43, %v1392_v39  ;;  %v533_v15 = vmul.f32 %v501_v60, %v501_v60 }
 0x161   :  { %v553_v19 = vadd.f32 %v552_v12, %v522_v10  ;;  %v503_v12 = vsub.f32 %v1336_v45, %v1392_v39  ;;  %v534_v22 = vmul.f32 %v502_v5, %v502_v5 }
 0x163   :  { %v554_v27 = vadd.f32 %v553_v19, %v523_v17  ;;  %v504_v19 = vsub.f32 %v1340_v48, %v1392_v39  ;;  %v535_v29 = vmul.f32 %v503_v12, %v503_v12 }
 0x165   :  { %v555_v31 = vadd.f32 %v554_v27, %v524_v24  ;;  %v505_v27 = vsub.f32 %v1344_v53, %v1392_v39  ;;  %v536_v33 = vmul.f32 %v504_v19, %v504_v19 }
 0x167   :  { %v556_v36 = vadd.f32 %v555_v31, %v525_v30  ;;  %v506_v31 = vsub.f32 %v1348_v56, %v1392_v39  ;;  %v537_v37 = vmul.f32 %v505_v27, %v505_v27 }
 0x169   :  { %v557_v42 = vadd.f32 %v556_v36, %v526_v34  ;;  %v507_v36 = vsub.f32 %v1352_v59, %v1392_v39  ;;  %v538_v50 = vmul.f32 %v506_v31, %v506_v31 }
 0x16b   :  { %v558_v46 = vadd.f32 %v557_v42, %v527_v41  ;;  %v508_v42 = vsub.f32 %v1356_v63, %v1392_v39  ;;  %v539_v47 = vmul.f32 %v507_v36, %v507_v36 }
 0x16d   :  { %v559_v54 = vadd.f32 %v558_v46, %v528_v44  ;;  %v509_v46 = vsub.f32 %v1360_v2, %v1392_v39  ;;  %v540_v49 = vmul.f32 %v508_v42, %v508_v42 }
 0x16f   :  { %v560_v62 = vadd.f32 %v559_v54, %v529_v51  ;;  %v510_v54 = vsub.f32 %v1364_v6, %v1392_v39  ;;  %v541_v60 = vmul.f32 %v509_v46, %v509_v46 }
 0x171   :  { %v561_v3 = vadd.f32 %v560_v62, %v530_v57  ;;  %v511_v62 = vsub.f32 %v1368_v9, %v1392_v39  ;;  %v542_v5 = vmul.f32 %v510_v54, %v510_v54 }
 0x173   :  { %v562_v10 = vadd.f32 %v561_v3, %v531_v1  ;;  %v512_v3 = vsub.f32 %v1372_v13, %v1392_v39  ;;  %v543_v12 = vmul.f32 %v511_v62, %v511_v62  ;;  %v595_v62 = vlaneseq }
 0x175   :  { %v563_v17 = vadd.f32 %v562_v10, %v532_v8  ;;  %v513_v10 = vsub.f32 %v1376_v16, %v1392_v39  ;;  %v544_v19 = vmul.f32 %v512_v3, %v512_v3 }
 0x177   :  { %v564_v24 = vadd.f32 %v563_v17, %v533_v15  ;;  %v514_v17 = vsub.f32 %v1380_v20, %v1392_v39  ;;  %v545_v27 = vmul.f32 %v513_v10, %v513_v10  ;;  %v591_v10 = vld [vmem:[%s1534_s4] sm:$0x1] }
 0x179   :  { %v565_v30 = vadd.f32 %v564_v24, %v534_v22  ;;  %v515_v24 = vsub.f32 %v1384_v23, %v1392_v39  ;;  %v546_v31 = vmul.f32 %v514_v17, %v514_v17 }
 0x17b   :  { %v566_v34 = vadd.f32 %v565_v30, %v535_v29  ;;  %v516_v30 = vsub.f32 %v1388_v26, %v1392_v39 }
 0x17d   :  { %v567_v41 = vadd.f32 %v566_v34, %v536_v33  ;;  %v547_v34 = vmul.f32 %v515_v24, %v515_v24 }
 0x17f   :  { %v568_v44 = vadd.f32 %v567_v41, %v537_v37  ;;  %v548_v37 = vmul.f32 %v516_v30, %v516_v30 }
 0x181   :  { %v569_v51 = vadd.f32 %v568_v44, %v538_v50 }
 0x183   :  { %v570_v57 = vadd.f32 %v569_v51, %v539_v47 }
 0x185   :  { %v571_v1 = vadd.f32 %v570_v57, %v540_v49 }
 0x187   :  { %v572_v8 = vadd.f32 %v571_v1, %v541_v60  ;;  %v596_v60 = vshrl.u32 %v595_v62, 7  ;;  %v587_v1 = vld [vmem:[%s1533_s3] sm:$0x1]  ;;  %s986_s3 = smov [#allocation2]  }
 0x188   :  { %s739_s4 = sshll.u32 %s986_s3, 4  ;;  %s740_s4 = int_to_ptr.vmem [resolvable:$true] %s739_s4 }
 0x189   :  { %v573_v15 = vadd.f32 %v572_v8, %v542_v5  ;;  %v597_v3 = vsub.s32 0, %v596_v60  ;;  %s964_s15 = scalar_lea.vmem %s740_s4, 4096  ;;  %p969_p1 = scmp.lt.s32.totalorder %s740_s4, %s740_s4 }
 0x18a   :  { %p965_p0 = scmp.ne.s32.totalorder %s740_s4, %s964_s15  ;;  %p970_p2 = scmp.lt.s32.totalorder %s964_s15, %s964_s15 }
 0x18b   :  { %v574_v22 = vadd.f32 %v573_v15, %v543_v12 }
 0x18c   :  { %p971_p3 = por %p970_p2, %p969_p1 }
 0x18d   :  { %v575_v29 = vadd.f32 %v574_v22, %v544_v19 }
 0x18e   :  { %p972_p4 = pnand %p971_p3, %p965_p0 }
 0x18f   :  { %v576_v33 = vadd.f32 %v575_v29, %v545_v27 }
 0x191   :  { %v577_v36 = vadd.f32 %v576_v33, %v546_v31 }
 0x193   :  { %v578_v41 = vadd.f32 %v577_v36, %v547_v34 }
 0x195   :  { %v579_v42 = vadd.f32 %v578_v41, %v548_v37 }
 0x197   :  { %v580_v50 = vrot.slane %v579_v42, 4 }
 0x199   :  { %v581_v44 = vadd.f32 %v580_v50, %v579_v42 }
 0x19b   :  { %v582_v46 = vrot.slane %v581_v44, 2 }
 0x19d   :  { %v583_v47 = vadd.f32 %v582_v46, %v581_v44 }
 0x19f   :  { %v584_v51 = vrot.slane %v583_v47, 1 }
 0x1a1   :  { %v585_v54 = vadd.f32 %v584_v51, %v583_v47 }
 0x1a3   :  { %v586_v49 = vmul.f32 0.00390625, %v585_v54 }
 0x1a5   :  { %v588_v57 = vadd.f32 1e-05, %v586_v49 }
 0x1a7   :  { %962 = vrsqrt.f32 %v588_v57 }
 0x1b4   :  { %v963_v5 = vpop.eup %962 }
 0x1b5   :  { %v590_v8 = vmul.f32 %v963_v5, %v587_v1 }
 0x1b7   :  { %v592_v12 = vmul.f32 %v590_v8, %v1392_v39  ;;  %v598_v15 = vrot.slane %v590_v8, %v597_v3 }
 0x1b9   :  { %v593_v17 = vsub.f32 %v591_v10, %v592_v12  ;;  %v630_v19 = vmul.f32 %v598_v15, %v1384_v23  ;;  %v600_v22 = vmul.f32 %v598_v15, %v1265_v52  ;;  %v601_v24 = vmul.f32 %v598_v15, %v1268_v55 }
 0x1ba   :  { %v602_v27 = vmul.f32 %v598_v15, %v1273_v58  ;;  %v603_v29 = vmul.f32 %v598_v15, %v1276_v61  ;;  %v604_v30 = vmul.f32 %v598_v15, %v1280_v0  ;;  %v605_v31 = vmul.f32 %v598_v15, %v1284_v4 }
 0x1bb   :  { %v636_v33 = vrot.slane %v593_v17, %v597_v3  ;;  %v606_v34 = vmul.f32 %v598_v15, %v1288_v7  ;;  %v607_v39 = vmul.f32 %v598_v15, %v1292_v11  ;;  %v608_v36 = vmul.f32 %v598_v15, %v1296_v14 }
 0x1bc   :  { %v609_v23 = vmul.f32 %v598_v15, %v1300_v18  ;;  %v610_v52 = vmul.f32 %v598_v15, %v1304_v21  ;;  %v611_v55 = vmul.f32 %v598_v15, %v1308_v25  ;;  %v612_v58 = vmul.f32 %v598_v15, %v1312_v28 }
 0x1bd   :  { %v668_v61 = vadd.f32 %v636_v33, %v630_v19  ;;  %v613_v0 = vmul.f32 %v598_v15, %v1316_v32  ;;  %v614_v4 = vmul.f32 %v598_v15, %v1320_v35  ;;  %v615_v37 = vmul.f32 %v598_v15, %v1324_v38 }
 0x1be   :  { %v616_v7 = vmul.f32 %v598_v15, %v1328_v40  ;;  %v617_v11 = vmul.f32 %v598_v15, %v1332_v43  ;;  %v618_v14 = vmul.f32 %v598_v15, %v1336_v45  ;;  %v619_v18 = vmul.f32 %v598_v15, %v1340_v48 }
 0x1bf   :  { %v700_v21 = vmax.f32 %v668_v61, 0.0  ;;  %v620_v25 = vmul.f32 %v598_v15, %v1344_v53  ;;  %v621_v28 = vmul.f32 %v598_v15, %v1348_v56  ;;  %v622_v41 = vmul.f32 %v598_v15, %v1352_v59 }
 0x1c0   :  { %v623_v32 = vmul.f32 %v598_v15, %v1356_v63  ;;  %v624_v35 = vmul.f32 %v598_v15, %v1360_v2  ;;  %v625_v38 = vmul.f32 %v598_v15, %v1364_v6  ;;  %v626_v40 = vmul.f32 %v598_v15, %v1368_v9 }
 0x1c1   :  { %732 = vst [vmem:[#allocation2 + $0xf0] sm:$0xff] %v700_v21  ;;  %v627_v43 = vmul.f32 %v598_v15, %v1372_v13  ;;  %v628_v45 = vmul.f32 %v598_v15, %v1376_v16  ;;  %v629_v48 = vmul.f32 %v598_v15, %v1380_v20  ;;  %v631_v53 = vmul.f32 %v598_v15, %v1388_v26 }
 0x1c2   :  { %v638_v56 = vadd.f32 %v636_v33, %v600_v22  ;;  %v639_v42 = vadd.f32 %v636_v33, %v601_v24  ;;  %v640_v59 = vadd.f32 %v636_v33, %v602_v27  ;;  %v641_v50 = vadd.f32 %v636_v33, %v603_v29 }
 0x1c3   :  { %v642_v63 = vadd.f32 %v636_v33, %v604_v30  ;;  %v643_v44 = vadd.f32 %v636_v33, %v605_v31  ;;  %v644_v2 = vadd.f32 %v636_v33, %v606_v34  ;;  %v645_v46 = vadd.f32 %v636_v33, %v607_v39 }
 0x1c4   :  { %v646_v6 = vadd.f32 %v636_v33, %v608_v36  ;;  %v647_v47 = vadd.f32 %v636_v33, %v609_v23  ;;  %v648_v9 = vadd.f32 %v636_v33, %v610_v52  ;;  %v649_v51 = vadd.f32 %v636_v33, %v611_v55 }
 0x1c5   :  { %v650_v54 = vadd.f32 %v636_v33, %v612_v58  ;;  %v651_v13 = vadd.f32 %v636_v33, %v613_v0  ;;  %v652_v49 = vadd.f32 %v636_v33, %v614_v4  ;;  %v653_v16 = vadd.f32 %v636_v33, %v615_v37 }
 0x1c6   :  { %v654_v57 = vadd.f32 %v636_v33, %v616_v7  ;;  %v655_v20 = vadd.f32 %v636_v33, %v617_v11  ;;  %v656_v62 = vadd.f32 %v636_v33, %v618_v14  ;;  %v657_v26 = vadd.f32 %v636_v33, %v619_v18 }
 0x1c7   :  { %v658_v60 = vadd.f32 %v636_v33, %v620_v25  ;;  %v1497_v1 = vadd.f32 %v636_v33, %v621_v28  ;;  %v1499_v3 = vadd.f32 %v636_v33, %v622_v41  ;;  %v1501_v5 = vadd.f32 %v636_v33, %v623_v32 }
 0x1c8   :  { %v1503_v8 = vadd.f32 %v636_v33, %v624_v35  ;;  %v1505_v10 = vadd.f32 %v636_v33, %v625_v38  ;;  %v1507_v12 = vadd.f32 %v636_v33, %v626_v40  ;;  %v1509_v15 = vadd.f32 %v636_v33, %v627_v43 }
 0x1c9   :  { %v1511_v17 = vadd.f32 %v636_v33, %v628_v45  ;;  %v1513_v19 = vadd.f32 %v636_v33, %v629_v48  ;;  %v1515_v22 = vadd.f32 %v636_v33, %v631_v53  ;;  %v670_v24 = vmax.f32 %v638_v56, 0.0 }
 0x1ca   :  { %v671_v27 = vmax.f32 %v639_v42, 0.0  ;;  %v672_v29 = vmax.f32 %v640_v59, 0.0  ;;  %v673_v30 = vmax.f32 %v641_v50, 0.0  ;;  %v674_v31 = vmax.f32 %v642_v63, 0.0 }
 0x1cb   :  { %v675_v34 = vmax.f32 %v643_v44, 0.0  ;;  %v676_v39 = vmax.f32 %v644_v2, 0.0  ;;  %v677_v36 = vmax.f32 %v645_v46, 0.0  ;;  %v678_v23 = vmax.f32 %v646_v6, 0.0  ;;  %702 = vst [vmem:[#allocation2] sm:$0xff] %v670_v24 }
 0x1cc   :  { %v679_v52 = vmax.f32 %v647_v47, 0.0  ;;  %v680_v55 = vmax.f32 %v648_v9, 0.0  ;;  %v681_v58 = vmax.f32 %v649_v51, 0.0  ;;  %v682_v61 = vmax.f32 %v650_v54, 0.0  ;;  %703 = vst [vmem:[#allocation2 + $0x8] sm:$0xff] %v671_v27  ;;  %704 = vst [vmem:[#allocation2 + $0x10] sm:$0xff] %v672_v29 }
 0x1cd   :  { %705 = vst [vmem:[#allocation2 + $0x18] sm:$0xff] %v673_v30  ;;  %706 = vst [vmem:[#allocation2 + $0x20] sm:$0xff] %v674_v31  ;;  %v683_v33 = vmax.f32 %v651_v13, 0.0  ;;  %v684_v0 = vmax.f32 %v652_v49, 0.0  ;;  %v685_v4 = vmax.f32 %v653_v16, 0.0  ;;  %v686_v37 = vmax.f32 %v654_v57, 0.0 }
 0x1ce   :  { %707 = vst [vmem:[#allocation2 + $0x28] sm:$0xff] %v675_v34  ;;  %708 = vst [vmem:[#allocation2 + $0x30] sm:$0xff] %v676_v39  ;;  %v687_v7 = vmax.f32 %v655_v20, 0.0  ;;  %v688_v11 = vmax.f32 %v656_v62, 0.0  ;;  %v689_v14 = vmax.f32 %v657_v26, 0.0  ;;  %v690_v18 = vmax.f32 %v658_v60, 0.0 }
 0x1cf   :  { %709 = vst [vmem:[#allocation2 + $0x38] sm:$0xff] %v677_v36  ;;  %710 = vst [vmem:[#allocation2 + $0x40] sm:$0xff] %v678_v23  ;;  %v691_v21 = vmax.f32 %v1497_v1, 0.0  ;;  %v692_v25 = vmax.f32 %v1499_v3, 0.0  ;;  %v693_v28 = vmax.f32 %v1501_v5, 0.0  ;;  %v694_v41 = vmax.f32 %v1503_v8, 0.0 }
 0x1d0   :  { %711 = vst [vmem:[#allocation2 + $0x48] sm:$0xff] %v679_v52  ;;  %712 = vst [vmem:[#allocation2 + $0x50] sm:$0xff] %v680_v55  ;;  %v695_v32 = vmax.f32 %v1505_v10, 0.0  ;;  %v696_v35 = vmax.f32 %v1507_v12, 0.0  ;;  %v697_v38 = vmax.f32 %v1509_v15, 0.0  ;;  %v698_v40 = vmax.f32 %v1511_v17, 0.0 }
 0x1d1   :  { %713 = vst [vmem:[#allocation2 + $0x58] sm:$0xff] %v681_v58  ;;  %714 = vst [vmem:[#allocation2 + $0x60] sm:$0xff] %v682_v61  ;;  %v699_v43 = vmax.f32 %v1513_v19, 0.0  ;;  %v701_v45 = vmax.f32 %v1515_v22, 0.0 }
 0x1d2   :  { %715 = vst [vmem:[#allocation2 + $0x68] sm:$0xff] %v683_v33  ;;  %716 = vst [vmem:[#allocation2 + $0x70] sm:$0xff] %v684_v0 }
 0x1d3   :  { %717 = vst [vmem:[#allocation2 + $0x78] sm:$0xff] %v685_v4  ;;  %718 = vst [vmem:[#allocation2 + $0x80] sm:$0xff] %v686_v37 }
 0x1d4   :  { %719 = vst [vmem:[#allocation2 + $0x88] sm:$0xff] %v687_v7  ;;  %720 = vst [vmem:[#allocation2 + $0x90] sm:$0xff] %v688_v11 }
 0x1d5   :  { %721 = vst [vmem:[#allocation2 + $0x98] sm:$0xff] %v689_v14  ;;  %722 = vst [vmem:[#allocation2 + $0xa0] sm:$0xff] %v690_v18 }
 0x1d6   :  { %723 = vst [vmem:[#allocation2 + $0xa8] sm:$0xff] %v691_v21  ;;  %724 = vst [vmem:[#allocation2 + $0xb0] sm:$0xff] %v692_v25 }
 0x1d7   :  { %725 = vst [vmem:[#allocation2 + $0xb8] sm:$0xff] %v693_v28  ;;  %726 = vst [vmem:[#allocation2 + $0xc0] sm:$0xff] %v694_v41 }
 0x1d8   :  { %727 = vst [vmem:[#allocation2 + $0xc8] sm:$0xff] %v695_v32  ;;  %728 = vst [vmem:[#allocation2 + $0xd0] sm:$0xff] %v696_v35 }
 0x1d9   :  { %729 = vst [vmem:[#allocation2 + $0xd8] sm:$0xff] %v697_v38  ;;  %730 = vst [vmem:[#allocation2 + $0xe0] sm:$0xff] %v698_v40 }
 0x1da   :  { %731 = vst [vmem:[#allocation2 + $0xe8] sm:$0xff] %v699_v43  ;;  %733 = vst [vmem:[#allocation2 + $0xf8] sm:$0xff] %v701_v45 }
 0x1db   :  { %975 = shalt.err (!%p972_p4)
}
 0x1dc   :  { %s987_s16 = smov 128   ;;  %s988_s17 = smov 8  }
 0x1dd   :  { %745 = dma.vmem_to_hbm [thread:$0]  %s740_s4, 4096, %s1535_s5, [#allocation3], %s987_s16, %s987_s16, %s988_s17  }
 0x1de   :  { %984 = dma.done.wait [#allocation3], 4096  }
 0x1df   :  { %985 = vsyncadd [#allocation3], 4294963200 }
 0x1e0   :  { %749 = vsyncpa [#allocation3], 1 }

</bundles_post_ra>
